<compile_context>
chip_gen: v7x
topology: tpu7x:2x2x1
jax: 0.10.0
libtpu: 0.0.40
codegen_flags: <defaults>
</compile_context>

<pallas_src>
import functools

import jax
import jax.numpy as jnp
import numpy as np
from jax.experimental import pallas as pl
from jax.experimental.pallas import tpu as pltpu


def bahdanau_attn_kernel(h_ref, w_ref, vb_ref, enc_ref, out_ref,
                         hproj_sc, m_sc, l_sc, *, num_s_tiles):
    """One grid step processes one (batch-block, S-tile) of encoder_outputs.

    h_ref     : (Bt, Hp)         bf16  decoder hidden state          (resident)
    w_ref     : (2*Hp, Hp)       bf16  packed attn weight [W_h; W_e] (resident)
    vb_ref    : (2, Hp)          f32   row 0 = v, row 1 = attn bias  (resident)
    enc_ref   : (Bt, St, Hp)     bf16  streamed S-tile of encoder outputs
    out_ref   : (n_s, Bt, St)    f32   attention weights (VMEM-resident over S)
    hproj_sc  : (Bt, Hp)         f32   scratch: h @ W_h + b
    m_sc/l_sc : (Bt, 1)          f32   online softmax running max / denominator
    """
    ki = pl.program_id(1)                       # S-tile index ("arbitrary" axis)
    Bt, St, Hp = enc_ref.shape

    @pl.when(ki == 0)
    def _():
        # Hidden projection + bias, computed once per batch block.
        hproj_sc[...] = (
            jnp.dot(h_ref[...], w_ref[:Hp, :], preferred_element_type=jnp.float32)
            + vb_ref[1:2, :])
        m_sc[...] = jnp.full_like(m_sc, -jnp.inf)
        l_sc[...] = jnp.zeros_like(l_sc)

    vb = vb_ref[...]                                           # (2, Hp) f32

    # energy = tanh(W_h h + W_e e + b): one fused K=N=Hp bf16 MXU matmul with
    # f32 accumulation per streamed tile.
    enc_proj = jnp.dot(enc_ref[...].reshape(Bt * St, Hp), w_ref[Hp:, :],
                       preferred_element_type=jnp.float32).reshape(Bt, St, Hp)
    energy = jnp.tanh(enc_proj + hproj_sc[...][:, None, :])    # (Bt, St, Hp) f32

    # scores[b, s] = v . energy[b, s, :]  -- VPU multiply + XLU lane reduce
    # (co-issues with the next tile's MXU work; do NOT turn into an N=1 matmul).
    s = jnp.sum(energy * vb[0][None, None, :], axis=-1)        # (Bt, St) f32

    # Stash raw scores into the resident output (leading-dim index => plain,
    # statically-shaped store; lane-dense when St is a multiple of 128).
    if num_s_tiles == 1:
        out_ref[0] = s
    else:
        out_ref[ki] = s

    # Online softmax statistics (single axis=-1 reductions, no 2-stage XLU).
    tile_max = jnp.max(s, axis=-1, keepdims=True)              # (Bt, 1)
    m_new = jnp.maximum(m_sc[...], tile_max)
    l_sc[...] = (jnp.exp(m_sc[...] - m_new) * l_sc[...]
                 + jnp.sum(jnp.exp(s - m_new), axis=-1, keepdims=True))
    m_sc[...] = m_new

    @pl.when(ki == num_s_tiles - 1)
    def _():
        m = m_sc[...]
        inv = pl.reciprocal(l_sc[...], approx=False)   # exact: rows sum to 1
        # Normalize tile-by-tile: only (Bt, St) live in vregs at a time.
        for t in range(num_s_tiles):
            out_ref[t] = jnp.exp(out_ref[t] - m) * inv


def _round_up(x, m):
    return ((x + m - 1) // m) * m


def _pick_block_b(B):
    # Only split batch when it stays sublane-aligned (div by 8); otherwise keep
    # the full batch in one block (always valid).
    if B > 8 and B % 8 == 0:
        return 8
    return B


def _vmem_limit_bytes():
    """Generation-aware scoped-VMEM limit (None => compiler default)."""
    try:
        kind = jax.devices()[0].device_kind.lower()
    except Exception:
        return None
    if "v7" in kind:
        return 48 * 1024 * 1024          # v7x: 64 MiB physical VMEM per core
    if any(g in kind for g in ("v4", "v5", "v6")):
        return 100 * 1024 * 1024         # 128 MiB physical VMEM
    return None


def _pick_block_s(S, Bt, Hp, budget_bytes):
    """Largest 128-multiple S-tile that divides S and fits the VMEM budget."""
    if budget_bytes is None:
        budget_bytes = 16 * 1024 * 1024
    # Small problem: whole enc (for one batch block) fits comfortably -> one
    # tile, near-gridless invocation (no pipeline / epilogue structure cost).
    if Bt * S * Hp * 2 <= 4 * 1024 * 1024:
        return S
    resident = (2 * Hp * Hp * 2          # packed weights (bf16)
                + 2 * Hp * 4             # [v; bias]
                + Bt * Hp * 2            # hidden (bf16)
                + max(Bt, 8) * Hp * 4)   # hproj scratch (padded sublanes)
    out_res = max(Bt, 8) * S * 4         # resident (n_s, Bt, St) f32 output
    for bs in (2048, 1024, 512, 256, 128):
        if S % bs != 0:
            continue
        enc_db = 2 * Bt * bs * Hp * 2    # double-buffered bf16 enc tile
        if resident + out_res + enc_db + (1 << 20) <= budget_bytes:
            return bs
    return S  # TODO(synk): pad S wrapper-side when no 128-multiple divisor fits


def bahdanau_attention(hidden, encoder_outputs, attn_w, attn_b, v,
                       *, block_s=None, block_b=None):
    """hidden (B,H) f32, encoder_outputs (B,S,H) f32,
    attn_w (H, 2H), attn_b (H,), v (H,) -- PyTorch parameter shapes."""
    B, S, H = encoder_outputs.shape
    # Pad feature dim to a lane/MXU-friendly multiple of 128 (zero padding is
    # numerically inert: padded weight/bias/v entries are zero).
    Hp = _round_up(H, 128)
    pad_h = Hp - H

    # ---- one-time parameter / activation packing (pure JAX glue) ----------
    w_packed = jnp.zeros((2 * Hp, Hp), jnp.bfloat16)
    w_packed = w_packed.at[:H, :H].set(attn_w[:, :H].T.astype(jnp.bfloat16))
    w_packed = w_packed.at[Hp:Hp + H, :H].set(attn_w[:, H:].T.astype(jnp.bfloat16))

    vb = jnp.zeros((2, Hp), jnp.float32)
    vb = vb.at[0, :H].set(v.astype(jnp.float32))
    vb = vb.at[1, :H].set(attn_b.astype(jnp.float32))

    h_bf = jnp.pad(hidden.astype(jnp.bfloat16), ((0, 0), (0, pad_h)))
    enc_bf = jnp.pad(encoder_outputs.astype(jnp.bfloat16),
                     ((0, 0), (0, 0), (0, pad_h)))

    # ---- tiling -------------------------------------------------------------
    if block_b is None:
        block_b = _pick_block_b(B)
    n_b = B // block_b

    vmem_limit = _vmem_limit_bytes()
    if block_s is None:
        block_s = _pick_block_s(S, block_b, Hp, vmem_limit)
    # bf16 packs two rows per sublane -> require block_s % 16 == 0 (or one tile).
    if S % block_s != 0 or (block_s % 16 != 0 and block_s != S):
        block_s = S
    n_s = S // block_s

    grid_spec = pltpu.PrefetchScalarGridSpec(
        num_scalar_prefetch=0,
        grid=(n_b, n_s),
        in_specs=[
            pl.BlockSpec((block_b, Hp), lambda b, k: (b, 0)),          # hidden
            pl.BlockSpec((2 * Hp, Hp), lambda b, k: (0, 0)),           # [W_h; W_e]
            pl.BlockSpec((2, Hp), lambda b, k: (0, 0)),                # [v; bias]
            pl.BlockSpec((block_b, block_s, Hp), lambda b, k: (b, k, 0)),  # enc stream
        ],
        # Output stays VMEM-resident across the whole S axis ("arbitrary"),
        # laid out as (n_s, Bt, St) so per-tile stores index the leading dim.
        out_specs=pl.BlockSpec((n_s, block_b, block_s), lambda b, k: (0, b, 0)),
        scratch_shapes=[
            pltpu.VMEM((block_b, Hp), jnp.float32),   # h @ W_h + b
            pltpu.VMEM((block_b, 1), jnp.float32),    # running max
            pltpu.VMEM((block_b, 1), jnp.float32),    # running denominator
        ],
    )

    out_tiled = pl.pallas_call(
        functools.partial(bahdanau_attn_kernel, num_s_tiles=n_s),
        out_shape=jax.ShapeDtypeStruct((n_s, B, block_s), jnp.float32),
        grid_spec=grid_spec,
        compiler_params=pltpu.CompilerParams(
            dimension_semantics=("parallel", "arbitrary"),
            vmem_limit_bytes=vmem_limit),
    )(h_bf, w_packed, vb, enc_bf)

    # (n_s, B, St) -> (B, S): tiny wrapper-side layout plumbing.
    return out_tiled.transpose(1, 0, 2).reshape(B, S)


def bahdanau_reference(hidden, enc, attn_w, attn_b, v):
    """Pure-JAX reference mirroring the PyTorch forward exactly."""
    B, S, H = enc.shape
    h_rep = jnp.broadcast_to(hidden[:, None, :], (B, S, H))
    cat = jnp.concatenate([h_rep, enc], axis=2)
    energy = jnp.tanh(cat @ attn_w.T + attn_b)          # (B, S, H)
    scores = jnp.einsum('h,bsh->bs', v, energy)         # (B, S)
    return jax.nn.softmax(scores, axis=1)


if __name__ == "__main__":
    def run_case(B, S, H, block_s=None):
        key = jax.random.PRNGKey(0)
        k0, k1, k2, k3, k4 = jax.random.split(key, 5)
        attn_w = jax.random.uniform(k0, (H, 2 * H), jnp.float32, -0.1, 0.1)
        attn_b = jax.random.uniform(k1, (H,), jnp.float32, -0.1, 0.1)
        v = jax.random.uniform(k2, (H,), jnp.float32, 0.0, 1.0)
        hidden = jax.random.normal(k3, (B, H), jnp.float32)
        enc = jax.random.normal(k4, (B, S, H), jnp.float32)

        out = jax.block_until_ready(
            bahdanau_attention(hidden, enc, attn_w, attn_b, v, block_s=block_s))
        assert out.shape == (B, S)

        # Tight check vs a reference using the same bf16 input quantization the
        # kernel uses; loose check vs the full-f32 module semantics.
        q = lambda a: a.astype(jnp.bfloat16).astype(jnp.float32)
        ref_q = bahdanau_reference(q(hidden), q(enc), q(attn_w), attn_b, v)
        ref_f32 = bahdanau_reference(hidden, enc, attn_w, attn_b, v)

        out_np = np.asarray(out)
        np.testing.assert_allclose(out_np, np.asarray(ref_q), rtol=2e-3, atol=2e-3)
        np.testing.assert_allclose(out_np, np.asarray(ref_f32), rtol=5e-2, atol=5e-3)
        np.testing.assert_allclose(out_np.sum(axis=1), np.ones(B),
                                   rtol=2e-3, atol=2e-3)

    # Module-scale demo shape (single-tile, near-gridless path).
    run_case(B=2, S=16, H=32)
    # Multi-tile path: streams encoder_outputs over S, exercising the online
    # softmax accumulation and the per-tile normalize epilogue.
    run_case(B=2, S=512, H=32, block_s=128)

    print("KERNEL_OK")
</pallas_src>

<mosaic_0001>
module attributes {stable_mosaic.version = 11 : i64} {
  func.func @bahdanau_attn_kernel(%arg0: i32, %arg1: i32, %arg2: memref<2x128xbf16, #tpu.memory_space<vmem>>, %arg3: memref<256x128xbf16, #tpu.memory_space<vmem>>, %arg4: memref<2x128xf32, #tpu.memory_space<vmem>>, %arg5: memref<2x16x128xbf16, #tpu.memory_space<vmem>>, %arg6: memref<1x2x16xf32, #tpu.memory_space<vmem>>, %arg7: memref<2x128xf32, #tpu.memory_space<vmem>>, %arg8: memref<2x1xf32, #tpu.memory_space<vmem>>, %arg9: memref<2x1xf32, #tpu.memory_space<vmem>>) attributes {dimension_semantics = [#tpu.dimension_semantics<parallel>, #tpu.dimension_semantics<arbitrary>], iteration_bounds = array<i64: 1, 1>, scalar_prefetch = 0 : i64, scratch_operands = 3 : i64, tpu.core_type = #tpu.core_type<tc>, window_params = [{transform_indices = @transform_0, window_bounds = array<i64: 2, 128>}, {pipeline_mode = #tpu.pipeline_mode<synchronous>, transform_indices = @transform_1, window_bounds = array<i64: 256, 128>}, {pipeline_mode = #tpu.pipeline_mode<synchronous>, transform_indices = @transform_2, window_bounds = array<i64: 2, 128>}, {transform_indices = @transform_3, window_bounds = array<i64: 2, 16, 128>}, {transform_indices = @transform_4, window_bounds = array<i64: 1, 2, 16>}]} {
    %c0_i32 = arith.constant 0 : i32
    %0 = arith.cmpi eq, %arg1, %c0_i32 : i32
    %1 = arith.extui %0 : i1 to i32
    %c0_i32_0 = arith.constant 0 : i32
    %2 = arith.cmpi ne, %1, %c0_i32_0 : i32
    scf.if %2 {
      %c0_26 = arith.constant 0 : index
      %c0_27 = arith.constant 0 : index
      %43 = vector.load %arg2[%c0_26, %c0_27] : memref<2x128xbf16, #tpu.memory_space<vmem>>, vector<2x128xbf16>
      %c0_28 = arith.constant 0 : index
      %c0_29 = arith.constant 0 : index
      %44 = vector.load %arg3[%c0_28, %c0_29] : memref<256x128xbf16, #tpu.memory_space<vmem>>, vector<128x128xbf16>
      %cst_30 = arith.constant dense<0.000000e+00> : vector<2x128xf32>
      %45 = tpu.matmul %43, %44, %cst_30 {dimension_numbers = #tpu.dot_dimension_numbers<[1], [0], [0], [1], [0, 0, 1, 1], [], []>} : vector<2x128xbf16>, vector<128x128xbf16>, vector<2x128xf32> -> vector<2x128xf32>
      %c1 = arith.constant 1 : index
      %c0_31 = arith.constant 0 : index
      %46 = vector.load %arg4[%c1, %c0_31] : memref<2x128xf32, #tpu.memory_space<vmem>>, vector<1x128xf32>
      %47 = vector.broadcast %46 : vector<1x128xf32> to vector<2x128xf32>
      %48 = arith.addf %45, %47 : vector<2x128xf32>
      %c0_32 = arith.constant 0 : index
      %c0_33 = arith.constant 0 : index
      %49 = vector.load %arg7[%c0_32, %c0_33] : memref<2x128xf32, #tpu.memory_space<vmem>>, vector<2x128xf32>
      tpu.vector_store %arg7[%c0_32, %c0_33], %48 {strides = array<i32>} : memref<2x128xf32, #tpu.memory_space<vmem>>, vector<2x128xf32>,
      %cst_34 = arith.constant 0xFF800000 : f32
      %50 = vector.broadcast %cst_34 : f32 to vector<2x1xf32>
      %c0_35 = arith.constant 0 : index
      %c0_36 = arith.constant 0 : index
      %51 = vector.load %arg8[%c0_35, %c0_36] : memref<2x1xf32, #tpu.memory_space<vmem>>, vector<2x1xf32>
      tpu.vector_store %arg8[%c0_35, %c0_36], %50 {strides = array<i32>} : memref<2x1xf32, #tpu.memory_space<vmem>>, vector<2x1xf32>,
      %cst_37 = arith.constant 0.000000e+00 : f32
      %52 = vector.broadcast %cst_37 : f32 to vector<2x1xf32>
      %c0_38 = arith.constant 0 : index
      %c0_39 = arith.constant 0 : index
      %53 = vector.load %arg9[%c0_38, %c0_39] : memref<2x1xf32, #tpu.memory_space<vmem>>, vector<2x1xf32>
      tpu.vector_store %arg9[%c0_38, %c0_39], %52 {strides = array<i32>} : memref<2x1xf32, #tpu.memory_space<vmem>>, vector<2x1xf32>,
    } else {
    }
    %c0 = arith.constant 0 : index
    %c0_1 = arith.constant 0 : index
    %3 = vector.load %arg4[%c0, %c0_1] : memref<2x128xf32, #tpu.memory_space<vmem>>, vector<2x128xf32>
    %c0_2 = arith.constant 0 : index
    %c0_3 = arith.constant 0 : index
    %c0_4 = arith.constant 0 : index
    %4 = vector.load %arg5[%c0_2, %c0_3, %c0_4] : memref<2x16x128xbf16, #tpu.memory_space<vmem>>, vector<2x16x128xbf16>
    %5 = vector.shape_cast %4 : vector<2x16x128xbf16> to vector<32x128xbf16>
    %c128 = arith.constant 128 : index
    %c0_5 = arith.constant 0 : index
    %6 = vector.load %arg3[%c128, %c0_5] : memref<256x128xbf16, #tpu.memory_space<vmem>>, vector<128x128xbf16>
    %cst = arith.constant dense<0.000000e+00> : vector<32x128xf32>
    %7 = tpu.matmul %5, %6, %cst {dimension_numbers = #tpu.dot_dimension_numbers<[1], [0], [0], [1], [0, 0, 1, 1], [], []>} : vector<32x128xbf16>, vector<128x128xbf16>, vector<32x128xf32> -> vector<32x128xf32>
    %8 = vector.shape_cast %7 : vector<32x128xf32> to vector<2x16x128xf32>
    %c0_6 = arith.constant 0 : index
    %c0_7 = arith.constant 0 : index
    %9 = vector.load %arg7[%c0_6, %c0_7] : memref<2x128xf32, #tpu.memory_space<vmem>>, vector<2x128xf32>
    %10 = vector.shape_cast %9 : vector<2x128xf32> to vector<2x1x128xf32>
    %11 = vector.broadcast %10 : vector<2x1x128xf32> to vector<2x16x128xf32>
    %12 = arith.addf %8, %11 : vector<2x16x128xf32>
    %13 = math.tanh %12 : vector<2x16x128xf32>
    %14 = vector.extract_strided_slice %3 {offsets = [0, 0], sizes = [1, 128], strides = [1, 1]} : vector<2x128xf32> to vector<1x128xf32>
    %15 = vector.shape_cast %14 : vector<1x128xf32> to vector<128xf32>
    %16 = vector.shape_cast %15 : vector<128xf32> to vector<1x1x128xf32>
    %17 = vector.broadcast %16 : vector<1x1x128xf32> to vector<2x16x128xf32>
    %18 = arith.mulf %13, %17 : vector<2x16x128xf32>
    %cst_8 = arith.constant dense<0.000000e+00> : vector<2x16xf32>
    %19 = vector.multi_reduction <add>, %18, %cst_8 [2] : vector<2x16x128xf32> to vector<2x16xf32>
    %c0_9 = arith.constant 0 : index
    %c0_10 = arith.constant 0 : index
    %c0_11 = arith.constant 0 : index
    %20 = vector.load %arg6[%c0_9, %c0_10, %c0_11] : memref<1x2x16xf32, #tpu.memory_space<vmem>>, vector<1x2x16xf32>
    %21 = vector.shape_cast %20 : vector<1x2x16xf32> to vector<2x16xf32>
    %22 = vector.shape_cast %19 : vector<2x16xf32> to vector<1x2x16xf32>
    tpu.vector_store %arg6[%c0_9, %c0_10, %c0_11], %22 {strides = array<i32>} : memref<1x2x16xf32, #tpu.memory_space<vmem>>, vector<1x2x16xf32>,
    %cst_12 = arith.constant dense<0xFF800000> : vector<2xf32>
    %23 = vector.multi_reduction <maximumf>, %19, %cst_12 [1] : vector<2x16xf32> to vector<2xf32>
    %24 = vector.shape_cast %23 : vector<2xf32> to vector<2x1xf32>
    %c0_13 = arith.constant 0 : index
    %c0_14 = arith.constant 0 : index
    %25 = vector.load %arg8[%c0_13, %c0_14] : memref<2x1xf32, #tpu.memory_space<vmem>>, vector<2x1xf32>
    %26 = arith.maximumf %25, %24 : vector<2x1xf32>
    %c0_15 = arith.constant 0 : index
    %c0_16 = arith.constant 0 : index
    %27 = vector.load %arg8[%c0_15, %c0_16] : memref<2x1xf32, #tpu.memory_space<vmem>>, vector<2x1xf32>
    %28 = arith.subf %27, %26 : vector<2x1xf32>
    %29 = math.exp %28 : vector<2x1xf32>
    %c0_17 = arith.constant 0 : index
    %c0_18 = arith.constant 0 : index
    %30 = vector.load %arg9[%c0_17, %c0_18] : memref<2x1xf32, #tpu.memory_space<vmem>>, vector<2x1xf32>
    %31 = arith.mulf %29, %30 : vector<2x1xf32>
    %32 = vector.broadcast %26 : vector<2x1xf32> to vector<2x16xf32>
    %33 = arith.subf %19, %32 : vector<2x16xf32>
    %34 = math.exp %33 : vector<2x16xf32>
    %cst_19 = arith.constant dense<0.000000e+00> : vector<2xf32>
    %35 = vector.multi_reduction <add>, %34, %cst_19 [1] : vector<2x16xf32> to vector<2xf32>
    %36 = vector.shape_cast %35 : vector<2xf32> to vector<2x1xf32>
    %37 = arith.addf %31, %36 : vector<2x1xf32>
    %c0_20 = arith.constant 0 : index
    %c0_21 = arith.constant 0 : index
    %38 = vector.load %arg9[%c0_20, %c0_21] : memref<2x1xf32, #tpu.memory_space<vmem>>, vector<2x1xf32>
    tpu.vector_store %arg9[%c0_20, %c0_21], %37 {strides = array<i32>} : memref<2x1xf32, #tpu.memory_space<vmem>>, vector<2x1xf32>,
    %c0_22 = arith.constant 0 : index
    %c0_23 = arith.constant 0 : index
    %39 = vector.load %arg8[%c0_22, %c0_23] : memref<2x1xf32, #tpu.memory_space<vmem>>, vector<2x1xf32>
    tpu.vector_store %arg8[%c0_22, %c0_23], %26 {strides = array<i32>} : memref<2x1xf32, #tpu.memory_space<vmem>>, vector<2x1xf32>,
    %c0_i32_24 = arith.constant 0 : i32
    %40 = arith.cmpi eq, %arg1, %c0_i32_24 : i32
    %41 = arith.extui %40 : i1 to i32
    %c0_i32_25 = arith.constant 0 : i32
    %42 = arith.cmpi ne, %41, %c0_i32_25 : i32
    scf.if %42 {
      %c0_26 = arith.constant 0 : index
      %c0_27 = arith.constant 0 : index
      %43 = vector.load %arg8[%c0_26, %c0_27] : memref<2x1xf32, #tpu.memory_space<vmem>>, vector<2x1xf32>
      %c0_28 = arith.constant 0 : index
      %c0_29 = arith.constant 0 : index
      %44 = vector.load %arg9[%c0_28, %c0_29] : memref<2x1xf32, #tpu.memory_space<vmem>>, vector<2x1xf32>
      %45 = tpu.reciprocal %44 : vector<2x1xf32> -> vector<2x1xf32>
      %c0_30 = arith.constant 0 : index
      %c0_31 = arith.constant 0 : index
      %c0_32 = arith.constant 0 : index
      %46 = vector.load %arg6[%c0_30, %c0_31, %c0_32] : memref<1x2x16xf32, #tpu.memory_space<vmem>>, vector<1x2x16xf32>
      %47 = vector.shape_cast %46 : vector<1x2x16xf32> to vector<2x16xf32>
      %48 = vector.broadcast %43 : vector<2x1xf32> to vector<2x16xf32>
      %49 = arith.subf %47, %48 : vector<2x16xf32>
      %50 = math.exp %49 : vector<2x16xf32>
      %51 = vector.broadcast %45 : vector<2x1xf32> to vector<2x16xf32>
      %52 = arith.mulf %50, %51 : vector<2x16xf32>
      %c0_33 = arith.constant 0 : index
      %c0_34 = arith.constant 0 : index
      %c0_35 = arith.constant 0 : index
      %53 = vector.load %arg6[%c0_33, %c0_34, %c0_35] : memref<1x2x16xf32, #tpu.memory_space<vmem>>, vector<1x2x16xf32>
      %54 = vector.shape_cast %53 : vector<1x2x16xf32> to vector<2x16xf32>
      %55 = vector.shape_cast %52 : vector<2x16xf32> to vector<1x2x16xf32>
      tpu.vector_store %arg6[%c0_33, %c0_34, %c0_35], %55 {strides = array<i32>} : memref<1x2x16xf32, #tpu.memory_space<vmem>>, vector<1x2x16xf32>,
    } else {
    }
    return
  }
  func.func @transform_0(%arg0: i32, %arg1: i32) -> (i32, i32) {
    %c0_i32 = arith.constant 0 : i32
    %c0_i32_0 = arith.constant 0 : i32
    return %arg0, %c0_i32 : i32, i32
  }
  func.func @transform_1(%arg0: i32, %arg1: i32) -> (i32, i32) {
    %c0_i32 = arith.constant 0 : i32
    %c0_i32_0 = arith.constant 0 : i32
    %c0_i32_1 = arith.constant 0 : i32
    return %c0_i32, %c0_i32_0 : i32, i32
  }
  func.func @transform_2(%arg0: i32, %arg1: i32) -> (i32, i32) {
    %c0_i32 = arith.constant 0 : i32
    %c0_i32_0 = arith.constant 0 : i32
    %c0_i32_1 = arith.constant 0 : i32
    return %c0_i32, %c0_i32_0 : i32, i32
  }
  func.func @transform_3(%arg0: i32, %arg1: i32) -> (i32, i32, i32) {
    %c0_i32 = arith.constant 0 : i32
    %c0_i32_0 = arith.constant 0 : i32
    return %arg0, %arg1, %c0_i32 : i32, i32, i32
  }
  func.func @transform_4(%arg0: i32, %arg1: i32) -> (i32, i32, i32) {
    %c0_i32 = arith.constant 0 : i32
    %c0_i32_0 = arith.constant 0 : i32
    %c0_i32_1 = arith.constant 0 : i32
    return %c0_i32, %arg0, %c0_i32_0 : i32, i32, i32
  }
}

</mosaic_0001>

<bundles_post_ra>
// kernel: tpu_custom_call.1
= control target key start
LH: loop header
LB: loop body
LE: loop exit
PB: predicated region body
PF: predicated region fallthrough
CT: control target
= control target key end

     0   :  { %9 = vsyncpa [#allocation6], 0  ;;  %s877_s0 = inlined_call_operand.hbm [shape: bf16[2,128], index: 0, kind: input, shape index: {}]   ;;  %s878_s1 = inlined_call_operand.hbm [shape: bf16[256,128], index: 1, kind: input, shape index: {}]   ;;  %s879_s2 = inlined_call_operand.vmem [shape: f32[2,128], index: 2, kind: input, shape index: {}]   ;;  %s880_s3 = inlined_call_operand.hbm [shape: bf16[2,16,128], index: 3, kind: input, shape index: {}]   ;;  %s881_s4 = inlined_call_operand.hbm [shape: f32[1,2,16], index: 4, kind: output, shape index: {}]  }
   0x1   :  { %10 = vsyncpa [#allocation9], 0 }
   0x2   :  { %11 = vsyncpa [#allocation7], 0  ;;  %s738_s15 = smov [#allocation8]   ;;  %s644_s19 = scalar_lea.hbm %s878_s1, 2048 }
   0x3   :  { %s27_s16 = sshll.u32 %s738_s15, 4  ;;  %p645_p0 = scmp.ne.s32.totalorder %s878_s1, %s644_s19  ;;  %s28_s16 = int_to_ptr.vmem [resolvable:$true] %s27_s16 }
   0x4   :  { %p648_p1 = scmp.lt.u32.totalorder %s644_s19, %s878_s1 }
   0x6   :  { %p650_p2 = pnand %p648_p1, %p645_p0 }
   0x8   :  { %653 = shalt.err (!%p650_p2)
}
   0x9   :  { %s654_s24 = scalar_lea.vmem %s28_s16, 2048  ;;  %p659_p4 = scmp.lt.s32.totalorder %s28_s16, %s28_s16 }
   0xa   :  { %p655_p3 = scmp.ne.s32.totalorder %s28_s16, %s654_s24  ;;  %p660_p5 = scmp.lt.s32.totalorder %s654_s24, %s654_s24 }
   0xc   :  { %p661_p6 = por %p660_p5, %p659_p4 }
   0xe   :  { %p662_p7 = pnand %p661_p6, %p655_p3 }
  0x10   :  { %665 = shalt.err (!%p662_p7)
}
  0x11   :  { %s739_s25 = smov 64   ;;  %s740_s26 = smov 4  }
  0x12   :  { %33 = dma.hbm_to_vmem [thread:$0]  %s878_s1, 2048, %s28_s16, [#allocation9], %s739_s25, %s739_s25, %s740_s26  }
  0x13   :  { %s741_s29 = smov [#allocation5]   ;;  %s742_s5 = smov [#allocation10]  }
  0x14   :  { %s18_s30 = sshll.u32 %s741_s29, 4  ;;  %s41_s6 = sshll.u32 %s742_s5, 4  ;;  %s19_s30 = int_to_ptr.vmem [resolvable:$true] %s18_s30  ;;  %s42_s6 = int_to_ptr.vmem [resolvable:$true] %s41_s6 }
  0x15   :  { %s666_s9 = scalar_lea.hbm %s877_s0, 16 }
  0x16   :  { %p667_p8 = scmp.ne.s32.totalorder %s877_s0, %s666_s9  ;;  %p670_p9 = scmp.lt.u32.totalorder %s666_s9, %s877_s0 }
  0x18   :  { %p672_p10 = pnand %p670_p9, %p667_p8 }
  0x1a   :  { %675 = shalt.err (!%p672_p10)
}
  0x1b   :  { %s676_s1 = scalar_lea.vmem %s19_s30, 16  ;;  %s680_s14 = scalar_lea.vmem %s19_s30, 32 }
  0x1c   :  { %p677_p11 = scmp.ne.s32.totalorder %s19_s30, %s676_s1  ;;  %p681_p12 = scmp.lt.s32.totalorder %s19_s30, %s19_s30 }
  0x1d   :  { %p682_p13 = scmp.lt.s32.totalorder %s680_s14, %s676_s1 }
  0x1f   :  { %p683_p0 = por %p682_p13, %p681_p12 }
  0x21   :  { %p684_p1 = pnand %p683_p0, %p677_p11 }
  0x23   :  { %687 = shalt.err (!%p684_p1)
}
  0x24   :  { %21 = dma.hbm_to_vmem [thread:$0]  %s877_s0, 16, %s19_s30, [#allocation6]  }
  0x25   :  { %s688_s19 = scalar_lea.hbm %s880_s3, 256 }
  0x26   :  { %p689_p2 = scmp.ne.s32.totalorder %s880_s3, %s688_s19  ;;  %p692_p3 = scmp.lt.u32.totalorder %s688_s19, %s880_s3 }
  0x28   :  { %p694_p4 = pnand %p692_p3, %p689_p2 }
  0x2a   :  { %697 = shalt.err (!%p694_p4)
}
  0x2b   :  { %s698_s24 = scalar_lea.vmem %s42_s6, 256  ;;  %p703_p6 = scmp.lt.s32.totalorder %s42_s6, %s42_s6 }
  0x2c   :  { %p699_p5 = scmp.ne.s32.totalorder %s42_s6, %s698_s24  ;;  %p704_p7 = scmp.lt.s32.totalorder %s698_s24, %s698_s24 }
  0x2e   :  { %p705_p8 = por %p704_p7, %p703_p6 }
  0x30   :  { %p706_p9 = pnand %p705_p8, %p699_p5 }
  0x32   :  { %709 = shalt.err (!%p706_p9)
}
  0x33   :  { %47 = dma.hbm_to_vmem [thread:$0]  %s880_s3, 256, %s42_s6, [#allocation9], %s739_s25, %s739_s25, %s740_s26  }
  0x34   :  { %732 = dma.done.wait [#allocation6], 16  }
  0x35   :  { %733 = vsyncadd [#allocation6], 4294967280 }
  0x36   :  { %734 = dma.done.wait [#allocation9], 2304  }
  0x37   :  { %735 = vsyncadd [#allocation9], 4294964992  ;;  %v743_v0 = vmov 0.0   ;;  %vm744_vm0 = vmmov 0   ;;  %v604_v1 = vld [vmem:[#allocation8] sm:$0xff]   ;;  %v605_v2 = vld [vmem:[#allocation8 + $0x8] sm:$0xff]   ;;  %v319_v23 = vlaneseq }
  0x38   :  { %551 = vmatprep.subr.bf16.mxu0 %v743_v0  ;;  %567 = vmatprep.mubr.msk.bf16.mxu0 %vm744_vm0, %v743_v0  ;;  %v607_v3 = vld [vmem:[#allocation8 + $0x40] sm:$0xff]   ;;  %v609_v4 = vld [vmem:[#allocation8 + $0x48] sm:$0xff]   ;;  %v606_v5 = vld [vmem:[#allocation8 + $0x10] sm:$0xff]   ;;  %v745_v21 = vmov 1966171168   ;;  %vm173_vm1 = vcmask 1024  }
  0x39   :  { %552 = vmatpush3.bf16.msra.mxu0 %v604_v1  ;;  %571 = vmatprep.subr.bf16.mxu1 %v607_v3  ;;  %v611_v6 = vld [vmem:[#allocation8 + $0x50] sm:$0xff]   ;;  %v608_v7 = vld [vmem:[#allocation8 + $0x18] sm:$0xff]   ;;  %v610_v9 = vld [vmem:[#allocation8 + $0x20] sm:$0xff]   ;;  %v317_v22 = vunpack.c.l.s4 %v745_v21  ;;  %v828_v30 = vshrl.u32 %v319_v23, 7  ;;  %v746_v57 = vmov -inf   ;;  %v369_v58 = vand.u32 127, %v319_v23 }
  0x3a   :  { %553 = vmatprep.subr.bf16.mxu0 %v743_v0  ;;  %572 = vmatpush3.bf16.msra.mxu1 %v607_v3  ;;  %v613_v8 = vld [vmem:[#allocation8 + $0x58] sm:$0xff]   ;;  %v615_v10 = vld [vmem:[#allocation8 + $0x60] sm:$0xff]   ;;  %v612_v12 = vld [vmem:[#allocation8 + $0x28] sm:$0xff]   ;;  %174 = vst.msk [vmem:[#allocation3] sm:$0x3] %vm173_vm1, %v746_v57  ;;  %vm379_vm2 = vcmask 130112  }
  0x3b   :  { %573 = vmatprep.subr.bf16.mxu1 %v609_v4  ;;  %v620_v11 = vld [vmem:[#allocation10] sm:$0xff]   ;;  %v617_v13 = vld [vmem:[#allocation8 + $0x68] sm:$0xff]   ;;  %v614_v14 = vld [vmem:[#allocation8 + $0x30] sm:$0xff]   ;;  %v318_v29 = vunpack.c.0.s8 %v317_v22  ;;  %v832_v36 = vsub.s32 0, %v828_v30  ;;  %175 = vst.msk [vmem:[#allocation4] sm:$0x3] %vm173_vm1, %v743_v0  ;;  %v372_v63 = vsub.s32 %v369_v58, %v828_v30 }
  0x3c   :  { %587 = vmatprep.mubr.bf16.mxu1 %v620_v11  ;;  %v618_v15 = vld [vmem:[#allocation8 + $0x70] sm:$0xff]   ;;  %v616_v16 = vld [vmem:[#allocation8 + $0x38] sm:$0xff]   ;;  %v621_v19 = vld [vmem:[#allocation10 + $0x8] sm:$0xff]   ;;  %v374_v59 = vadd.s32 4294967288, %v369_v58  ;;  %vm390_vm3 = vcmask 1041409   ;;  %vm393_vm4 = vcmask 123904  }
  0x3d   :  { %554 = vmatpush3.bf16.msra.mxu0 %v605_v2  ;;  %v619_v17 = vld [vmem:[#allocation8 + $0x78] sm:$0xff]   ;;  %v512_v20 = vld [vmem:[%s879_s2 + $0x1] ss:$0 sm:$0xff]  ;;  %v321_v34 = vsub.s32 %v318_v29, %v828_v30 }
  0x3e   :  { %555 = vmatprep.subr.bf16.mxu0 %v743_v0  ;;  %574 = vmatpush3.bf16.msra.mxu1 %v609_v4  ;;  %v62_v18 = vld [vmem:[#allocation5] sm:$0x1]  ;;  %v176_v47 = vld [vmem:[%s879_s2] sm:$0x3]  ;;  %v844_v61 = vsub.s32 %v374_v59, %v828_v30  ;;  %s748_s2 = smov [#allocation11]  }
  0x3f   :  { %575 = vmatprep.subr.bf16.mxu1 %v611_v6  ;;  %v351_v48 = vrot.slane %v176_v47, %v832_v36  ;;  %s502_s29 = sshll.u32 %s748_s2, 4  ;;  %s503_s29 = int_to_ptr.vmem [resolvable:$true] %s502_s29 }
  0x40   :  { %s710_s30 = scalar_lea.vmem %s503_s29, 32  ;;  %p715_p11 = scmp.lt.s32.totalorder %s503_s29, %s503_s29 }
  0x41   :  { %556 = vmatpush3.bf16.msra.mxu0 %v606_v5  ;;  %v398_v11 = vld [vmem:[#allocation3] sm:$0x3]  ;;  %p711_p10 = scmp.ne.s32.totalorder %s503_s29, %s710_s30  ;;  %p716_p12 = scmp.lt.s32.totalorder %s710_s30, %s710_s30 }
  0x42   :  { %557 = vmatprep.subr.bf16.mxu0 %v743_v0  ;;  %576 = vmatpush3.bf16.msra.mxu1 %v611_v6 }
  0x43   :  { %577 = vmatprep.subr.bf16.mxu1 %v613_v8  ;;  %p717_p13 = por %p716_p12, %p715_p11 }
  0x45   :  { %558 = vmatpush3.bf16.msra.mxu0 %v608_v7  ;;  %p718_p0 = pnand %p717_p13, %p711_p10 }
  0x46   :  { %559 = vmatprep.subr.bf16.mxu0 %v743_v0  ;;  %578 = vmatpush3.bf16.msra.mxu1 %v613_v8 }
  0x47   :  { %579 = vmatprep.subr.bf16.mxu1 %v615_v10 }
  0x49   :  { %560 = vmatpush3.bf16.msra.mxu0 %v610_v9 }
  0x4a   :  { %561 = vmatprep.subr.bf16.mxu0 %v743_v0  ;;  %580 = vmatpush3.bf16.msra.mxu1 %v615_v10  ;;  %v747_v10 = vmov 0  }
  0x4b   :  { %581 = vmatprep.subr.bf16.mxu1 %v617_v13  ;;  %602 = vset.pattern.permute.xlu1 %v747_v10 }
  0x4c   :  { %603 = vset.pattern.permute.xlu0 %v747_v10 }
  0x4d   :  { %562 = vmatpush3.bf16.msra.mxu0 %v612_v12 }
  0x4e   :  { %563 = vmatprep.subr.bf16.mxu0 %v743_v0  ;;  %582 = vmatpush3.bf16.msra.mxu1 %v617_v13 }
  0x4f   :  { %583 = vmatprep.subr.bf16.mxu1 %v618_v15 }
  0x51   :  { %564 = vmatpush3.bf16.msra.mxu0 %v614_v14 }
  0x52   :  { %565 = vmatprep.subr.bf16.mxu0 %v743_v0  ;;  %584 = vmatpush3.bf16.msra.mxu1 %v618_v15  ;;  %v415_v15 = vsub.s32 1, %v828_v30 }
  0x53   :  { %585 = vmatprep.subr.bf16.mxu1 %v619_v17 }
  0x55   :  { %566 = vmatpush3.bf16.msra.mxu0 %v616_v16 }
  0x56   :  { %586 = vmatpush3.bf16.msra.mxu1 %v619_v17 }
  0x58   :  { %568 = vmatmul.mubr.bf16.vlgmr.msra.gmra.mrb[0].mxu0 %v62_v18 }
  0x59   :  { %588 = vmatmul.mubr.bf16.vlgmr.msra.gmra.mrb[0].mxu1 %v621_v19 }
 0x12b   :  { %v166_v24 = vpop.f32.mrb[0].mxu0 }
 0x12c   :  { %v167_v25 = vadd.f32 %v512_v20, %v166_v24  ;;  %v569_v26 = vpop.f32.mrb[1].mxu0  ;;  %v589_v31 = vpop.f32.mrb[0].mxu1 }
 0x12d   :  { %v169_v27 = vpop.f32.mrb[2].mxu0  ;;  %v291_v32 = vpop.f32.mrb[1].mxu1 }
 0x12e   :  { %172 = vst [vmem:[#allocation2] sm:$0x3] %v167_v25  ;;  %v570_v28 = vpop.f32.mrb[3].mxu0  ;;  %v590_v33 = vpop.f32.mrb[2].mxu1 }
 0x12f   :  { %v294_v35 = vpop.f32.mrb[3].mxu1 }
 0x135   :  { %v531_v37 = vld.sshfl [vmem:[#allocation2] sm:$0x11 pattern:$0x75316420] }
 0x136   :  { %v315_v38 = vcombine.high %v531_v37, %v531_v37  ;;  %v322_v39 = vrot.slane %v531_v37, %v321_v34 }
 0x138   :  { %v329_v40 = vrot.slane %v315_v38, %v321_v34  ;;  %v333_v41 = vrot.slane %v322_v39, %v832_v36 }
 0x13a   :  { %v337_v42 = vrot.slane %v329_v40, %v832_v36  ;;  %v340_v43 = vadd.f32 %v333_v41, %v291_v32  ;;  %v341_v44 = vadd.f32 %v333_v41, %v294_v35 }
 0x13c   :  { %v342_v45 = vadd.f32 %v589_v31, %v337_v42  ;;  %622 = vtanh.f32 %v340_v43  ;;  %v343_v46 = vadd.f32 %v590_v33, %v337_v42 }
 0x13d   :  { %624 = vtanh.f32 %v341_v44 }
 0x13e   :  { %626 = vtanh.f32 %v342_v45 }
 0x13f   :  { %628 = vtanh.f32 %v343_v46  ;;  %v403_v46 = vld [vmem:[#allocation4] sm:$0x3] }
 0x146   :  { %v623_v49 = vpop.eup %622 }
 0x147   :  { %v625_v50 = vpop.eup %624  ;;  %v352_v51 = vmul.f32 %v623_v49, %v351_v48 }
 0x148   :  { %v627_v52 = vpop.eup %626  ;;  %v353_v55 = vmul.f32 %v625_v50, %v351_v48 }
 0x149   :  { %356 = vadd.xlane.f32.xlu0 %v352_v51  ;;  %v354_v53 = vmul.f32 %v627_v52, %v351_v48  ;;  %v629_v54 = vpop.eup %628 }
 0x14a   :  { %v355_v56 = vmul.f32 %v629_v54, %v351_v48 }
 0x14b   :  { %360 = vadd.xlane.f32.xlu1 %v354_v53 }
 0x14d   :  { %358 = vadd.xlane.f32.xlu0 %v353_v55 }
 0x14f   :  { %362 = vadd.xlane.f32.xlu1 %v355_v56 }
 0x1d6   :  { %v357_v60 = vpop.xlane.xlu0 %356 }
 0x1d7   :  { %v373_v4 = vrot.slane %v357_v60, %v372_v63 }
 0x1d8   :  { %v361_v62 = vpop.xlane.xlu1 %360 }
 0x1d9   :  { %v384_v5 = vrot.slane %v361_v62, %v372_v63 }
 0x1da   :  { %v359_v1 = vpop.xlane.xlu0 %358 }
 0x1db   :  { %v378_v2 = vrot.slane %v359_v1, %v844_v61 }
 0x1dc   :  { %v363_v3 = vpop.xlane.xlu1 %362 }
 0x1dd   :  { %v388_v6 = vrot.slane %v363_v3, %v844_v61  ;;  %v380_v0 = vsel %vm379_vm2, %v378_v2, %v373_v4 }
 0x1df   :  { %v389_v7 = vsel %vm379_vm2, %v388_v6, %v384_v5 }
 0x1e0   :  { %v391_v8 = vsel %vm390_vm3, %v389_v7, %v380_v0 }
 0x1e1   :  { %v395_v9 = vsel %vm393_vm4, %v391_v8, -inf  ;;  %394 = vst.msk [vmem:[#allocation11] sm:$0x3] %vm393_vm4, %v391_v8 }
 0x1e2   :  { %396 = vmax.xlane.f32.xlu0 %v395_v9 }
 0x1e8   :  { %v480_v53 = vld [vmem:[#allocation11] sm:$0x3] }
 0x26f   :  { %v397_v12 = vpop.xlane.xlu0 %396 }
 0x270   :  { %v399_v13 = vmax.f32 %v398_v11, %v397_v12 }
 0x272   :  { %v400_v14 = vsub.f32 %v398_v11, %v399_v13  ;;  %473 = vst.msk [vmem:[#allocation3] sm:$0x3] %vm173_vm1, %v399_v13  ;;  %407 = vperm.xlu1 %602, %v399_v13  }
 0x274   :  { %v401_v44 = vmul.f32 1.442695, %v400_v14 }
 0x279   :  { %v477_v29 = vld [vmem:[#allocation3] sm:$0x3] }
 0x2f1   :  { %v408_v16 = vpop.permute.xlu1 %407 }
 0x2f2   :  { %v412_v17 = vrot.slane %v408_v16, %v832_v36  ;;  %v416_v18 = vrot.slane %v408_v16, %v415_v15 }
 0x2f4   :  { %v419_v19 = vsub.f32 %v357_v60, %v412_v17  ;;  %v420_v20 = vsub.f32 %v359_v1, %v412_v17  ;;  %v421_v21 = vsub.f32 %v361_v62, %v416_v18  ;;  %v422_v24 = vsub.f32 %v363_v3, %v416_v18 }
 0x2f6   :  { %v423_v22 = vmul.f32 1.442695, %v419_v19  ;;  %v425_v23 = vmul.f32 1.442695, %v420_v20  ;;  %v427_v25 = vmul.f32 1.442695, %v421_v21 }
 0x2f7   :  { %v429_v26 = vmul.f32 1.442695, %v422_v24 }
 0x2f8   :  { %630 = vpow2.f32 %v423_v22 }
 0x2f9   :  { %632 = vpow2.f32 %v425_v23 }
 0x2fa   :  { %634 = vpow2.f32 %v427_v25 }
 0x2fb   :  { %636 = vpow2.f32 %v429_v26 }
 0x2fc   :  { %638 = vpow2.f32 %v401_v44 }
 0x302   :  { %v631_v27 = vpop.eup %630 }
 0x303   :  { %v633_v28 = vpop.eup %632  ;;  %436 = vperm.xlu0 %603, %v631_v27  }
 0x304   :  { %439 = vperm.xlu1 %602, %v633_v28   ;;  %v635_v30 = vpop.eup %634 }
 0x305   :  { %v637_v31 = vpop.eup %636 }
 0x306   :  { %v639_v45 = vpop.eup %638 }
 0x307   :  { %483 = vperm.xlu0 %603, %v477_v29   ;;  %v404_v47 = vmul.f32 %v639_v45, %v403_v46 }
 0x308   :  { %442 = vperm.xlu1 %602, %v635_v30  }
 0x30c   :  { %445 = vperm.xlu1 %602, %v637_v31  }
 0x382   :  { %v437_v33 = vpop.permute.xlu0 %436 }
 0x383   :  { %v440_v32 = vpop.permute.xlu1 %439  ;;  %v450_v36 = vrot.slane %v437_v33, %v372_v63 }
 0x384   :  { %v454_v35 = vrot.slane %v440_v32, %v844_v61 }
 0x386   :  { %v455_v40 = vsel %vm379_vm2, %v454_v35, %v450_v36  ;;  %v484_v52 = vpop.permute.xlu0 %483 }
 0x387   :  { %v443_v34 = vpop.permute.xlu1 %442  ;;  %v486_v54 = vsub.f32 %v480_v53, %v484_v52 }
 0x388   :  { %v459_v38 = vrot.slane %v443_v34, %v372_v63 }
 0x389   :  { %v487_v55 = vmul.f32 1.442695, %v486_v54 }
 0x38b   :  { %v446_v37 = vpop.permute.xlu1 %445 }
 0x38c   :  { %v463_v39 = vrot.slane %v446_v37, %v844_v61 }
 0x38e   :  { %v464_v41 = vsel %vm379_vm2, %v463_v39, %v459_v38 }
 0x38f   :  { %v465_v42 = vsel %vm390_vm3, %v464_v41, %v455_v40 }
 0x390   :  { %v467_v43 = vsel %vm393_vm4, %v465_v42, 0.0 }
 0x391   :  { %468 = vadd.xlane.f32.xlu1 %v467_v43 }
 0x41e   :  { %v469_v48 = vpop.xlane.xlu1 %468 }
 0x41f   :  { %v470_v49 = vadd.f32 %v469_v48, %v404_v47 }
 0x421   :  { %472 = vst.msk [vmem:[#allocation4] sm:$0x3] %vm173_vm1, %v470_v49 }
 0x428   :  { %v478_v50 = vld [vmem:[#allocation4] sm:$0x3] }
 0x429   :  { %640 = vrcp.f32 %v478_v50 }
 0x42a   :  { %642 = vpow2.f32 %v487_v55 }
 0x433   :  { %v641_v51 = vpop.eup %640 }
 0x434   :  { %491 = vperm.xlu0 %603, %v641_v51   ;;  %v643_v56 = vpop.eup %642 }
 0x4b3   :  { %v492_v57 = vpop.permute.xlu0 %491 }
 0x4b4   :  { %v494_v58 = vmul.f32 %v643_v56, %v492_v57 }
 0x4b6   :  { %495 = vst.msk [vmem:[#allocation11] sm:$0x3] %vm393_vm4, %v494_v58 }
 0x4b7   :  { %721 = shalt.err (!%p718_p0)
}
 0x4b8   :  { %s722_s7 = scalar_lea.hbm %s881_s4, 32 }
 0x4b9   :  { %p723_p1 = scmp.ne.s32.totalorder %s881_s4, %s722_s7  ;;  %p726_p2 = scmp.lt.u32.totalorder %s722_s7, %s881_s4 }
 0x4bb   :  { %p728_p3 = pnand %p726_p2, %p723_p1 }
 0x4bd   :  { %731 = shalt.err (!%p728_p3)
}
 0x4be   :  { %505 = dma.vmem_to_hbm [thread:$0]  %s503_s29, 32, %s881_s4, [#allocation7]  }
 0x4bf   :  { %736 = dma.done.wait [#allocation7], 32  }
 0x4c0   :  { %737 = vsyncadd [#allocation7], 4294967264 }
 0x4c1   :  { %509 = vsyncpa [#allocation6], 1 }
 0x4c2   :  { %510 = vsyncpa [#allocation9], 1 }
 0x4c3   :  { %511 = vsyncpa [#allocation7], 1 }

</bundles_post_ra>
